<compile_context>
chip_gen: v6e
topology: v6e:2x2x1
jax: 0.10.0
libtpu: 0.0.40
codegen_flags: <defaults>
</compile_context>

<pallas_src>
import jax
import jax.numpy as jnp
from jax.experimental import pallas as pl
from jax.experimental.pallas import tpu as pltpu

HIDDEN_DIM = 512
LANE = 128


def _round_up(n, m):
    return ((n + m - 1) // m) * m


def _mlp_softmax_kernel(x_ref, w1_ref, b1_ref, w2_ref, b2_ref, w3_ref, b3_ref,
                        o_ref):
    # Cast the activation tile to bf16 in-kernel (VPU) -- avoids a separate
    # XLA cast/pad pass over x in HBM.
    x = x_ref[...].astype(jnp.bfloat16)

    # fc1 + ReLU  (bf16 MXU matmul, f32 accumulate)
    h1 = jnp.dot(x, w1_ref[...], preferred_element_type=jnp.float32)
    h1 = jnp.maximum(h1 + b1_ref[...], 0.0).astype(jnp.bfloat16)

    # fc2 + ReLU
    h2 = jnp.dot(h1, w2_ref[...], preferred_element_type=jnp.float32)
    h2 = jnp.maximum(h2 + b2_ref[...], 0.0).astype(jnp.bfloat16)

    # fc3 (padded action columns carry -inf bias -> exp == 0 below)
    scores = jnp.dot(h2, w3_ref[...], preferred_element_type=jnp.float32)
    scores = scores + b3_ref[...]

    # softmax over the (padded, lane-dense) action axis
    m = jnp.max(scores, axis=-1, keepdims=True)
    e = jnp.exp(scores - m)
    denom = jnp.sum(e, axis=-1, keepdims=True)
    inv = pl.reciprocal(denom, approx=True)      # EUP vrcp
    inv = inv * (2.0 - denom * inv)              # one Newton step -> f32 accuracy
    o_ref[...] = (e * inv).astype(o_ref.dtype)


def _resident_spec(shape):
    """Constant-index-map BlockSpec; single-buffered (resident across grid)."""
    const = lambda i: (0,) * len(shape)
    try:
        return pl.BlockSpec(shape, const, pipeline_mode=pl.Buffered(1))
    except TypeError:
        # older BlockSpec signature without pipeline_mode -- fall back
        return pl.BlockSpec(shape, const)


def _choose_batch_tile(batch):
    """Big tiles amortize grid-step overhead; 2+ steps engage the v7x megacore."""
    b8 = _round_up(batch, 8)
    tb = min(512, b8)
    if 16 <= b8 <= 512:
        # whole batch would fit one step -> split into two tiles so both
        # TensorCores (v7x) get work on the "parallel" batch axis.
        tb = _round_up((b8 + 1) // 2, 8)
    return tb


def prepare_params(params):
    """One-time preparation: bf16 casts + lane padding, hoisted off the hot path.

    params: dict with w1 (in,512), b1 (1,512), w2 (512,512), b2 (1,512),
            w3 (512, action_dim), b3 (1, action_dim)  -- weights pre-transposed
            so the kernel computes x @ W + b (matches PyTorch x @ W.T + b).
    """
    bf16, f32 = jnp.bfloat16, jnp.float32
    action_dim = params["w3"].shape[1]
    out_pad = _round_up(action_dim, LANE)

    w3 = jnp.zeros((HIDDEN_DIM, out_pad), bf16).at[:, :action_dim].set(
        params["w3"].astype(bf16))
    b3 = jnp.full((1, out_pad), -jnp.inf, f32).at[:, :action_dim].set(
        params["b3"].astype(f32))

    return {
        "w1": params["w1"].astype(bf16),                    # (input_dim, 512), true K
        "b1": params["b1"].astype(f32).reshape(1, HIDDEN_DIM),
        "w2": params["w2"].astype(bf16),
        "b2": params["b2"].astype(f32).reshape(1, HIDDEN_DIM),
        "w3": w3,
        "b3": b3,
        "action_dim": action_dim,                           # static metadata
    }


def arbitrator_ceo_forward(x, prep, out_dtype=jnp.float32):
    """Forward pass with a batch-tiled Pallas kernel.

    x:    (batch, input_dim) float32
    prep: output of prepare_params()
    """
    batch, input_dim = x.shape
    action_dim = prep["action_dim"]
    out_pad = prep["w3"].shape[1]

    tb = _choose_batch_tile(batch)
    batch_pad = _round_up(batch, tb)
    grid = (batch_pad // tb,)

    # Only pad the batch axis (partial last tile); feature axis stays unpadded.
    if batch_pad != batch:
        x_in = jnp.zeros((batch_pad, input_dim), x.dtype).at[:batch].set(x)
    else:
        x_in = x

    flops = 2 * batch_pad * (input_dim * HIDDEN_DIM
                             + HIDDEN_DIM * HIDDEN_DIM
                             + HIDDEN_DIM * out_pad)
    bytes_accessed = (x_in.size * x_in.dtype.itemsize
                      + prep["w1"].size * 2 + prep["w2"].size * 2
                      + prep["w3"].size * 2
                      + prep["b1"].size * 4 + prep["b2"].size * 4
                      + prep["b3"].size * 4
                      + batch_pad * out_pad * jnp.dtype(out_dtype).itemsize)

    out = pl.pallas_call(
        _mlp_softmax_kernel,
        out_shape=jax.ShapeDtypeStruct((batch_pad, out_pad), out_dtype),
        grid=grid,
        in_specs=[
            pl.BlockSpec((tb, input_dim), lambda i: (i, 0)),   # x tile (pipelined)
            _resident_spec((input_dim, HIDDEN_DIM)),           # w1 (resident)
            _resident_spec((1, HIDDEN_DIM)),                   # b1
            _resident_spec((HIDDEN_DIM, HIDDEN_DIM)),          # w2
            _resident_spec((1, HIDDEN_DIM)),                   # b2
            _resident_spec((HIDDEN_DIM, out_pad)),             # w3
            _resident_spec((1, out_pad)),                      # b3
        ],
        out_specs=pl.BlockSpec((tb, out_pad), lambda i: (i, 0)),
        compiler_params=pltpu.CompilerParams(
            dimension_semantics=("parallel",)),
        cost_estimate=pl.CostEstimate(
            flops=flops,
            transcendentals=batch_pad * out_pad,
            bytes_accessed=bytes_accessed),
    )(x_in, prep["w1"], prep["b1"], prep["w2"], prep["b2"],
      prep["w3"], prep["b3"])

    return out[:batch, :action_dim]


def init_params(key, input_dim, action_dim):
    """PyTorch-style init (uniform(-1/sqrt(fan_in), 1/sqrt(fan_in)))."""
    ks = jax.random.split(key, 6)

    def lin(kw, kb, fan_in, fan_out):
        bound = 1.0 / jnp.sqrt(jnp.float32(fan_in))
        # stored transposed: (fan_in, fan_out) so the kernel does x @ W
        w = jax.random.uniform(kw, (fan_in, fan_out), jnp.float32, -bound, bound)
        b = jax.random.uniform(kb, (1, fan_out), jnp.float32, -bound, bound)
        return w, b

    w1, b1 = lin(ks[0], ks[1], input_dim, HIDDEN_DIM)
    w2, b2 = lin(ks[2], ks[3], HIDDEN_DIM, HIDDEN_DIM)
    w3, b3 = lin(ks[4], ks[5], HIDDEN_DIM, action_dim)
    return {"w1": w1, "b1": b1, "w2": w2, "b2": b2, "w3": w3, "b3": b3}


def reference_forward_f32(x, params):
    h1 = jnp.maximum(x @ params["w1"] + params["b1"], 0.0)
    h2 = jnp.maximum(h1 @ params["w2"] + params["b2"], 0.0)
    s = h2 @ params["w3"] + params["b3"]
    return jax.nn.softmax(s, axis=1)


def reference_forward_bf16(x, params):
    """Mirrors the kernel's bf16-input / f32-accumulate matmul precision."""
    bf16, f32 = jnp.bfloat16, jnp.float32
    h1 = jnp.dot(x.astype(bf16), params["w1"].astype(bf16),
                 preferred_element_type=f32) + params["b1"]
    h1 = jnp.maximum(h1, 0.0)
    h2 = jnp.dot(h1.astype(bf16), params["w2"].astype(bf16),
                 preferred_element_type=f32) + params["b2"]
    h2 = jnp.maximum(h2, 0.0)
    s = jnp.dot(h2.astype(bf16), params["w3"].astype(bf16),
                preferred_element_type=f32) + params["b3"]
    return jax.nn.softmax(s, axis=1)


if __name__ == "__main__":
    key = jax.random.PRNGKey(0)
    k_x, k_x2, k_p = jax.random.split(key, 3)

    input_dim, action_dim = 32, 16
    params = init_params(k_p, input_dim, action_dim)
    prep = prepare_params(params)           # hoisted weight padding / casts

    # case 1: small batch, single grid step
    batch = 8
    x = jax.random.normal(k_x, (batch, input_dim), jnp.float32)
    out = jax.block_until_ready(arbitrator_ceo_forward(x, prep))
    assert out.shape == (batch, action_dim)

    ref_bf16 = reference_forward_bf16(x, params)
    assert jnp.allclose(out, ref_bf16, atol=2e-4, rtol=2e-4), (
        jnp.max(jnp.abs(out - ref_bf16)))
    ref_f32 = reference_forward_f32(x, params)
    assert jnp.allclose(out, ref_f32, atol=2e-2), (
        jnp.max(jnp.abs(out - ref_f32)))
    assert jnp.allclose(jnp.sum(out, axis=1), jnp.ones((batch,)), atol=1e-5)

    # case 2: larger batch -> 2 grid steps (megacore path) + partial last tile
    batch2 = 40
    x2 = jax.random.normal(k_x2, (batch2, input_dim), jnp.float32)
    out2 = jax.block_until_ready(arbitrator_ceo_forward(x2, prep))
    assert out2.shape == (batch2, action_dim)

    ref2_bf16 = reference_forward_bf16(x2, params)
    assert jnp.allclose(out2, ref2_bf16, atol=2e-4, rtol=2e-4), (
        jnp.max(jnp.abs(out2 - ref2_bf16)))
    assert jnp.allclose(jnp.sum(out2, axis=1), jnp.ones((batch2,)), atol=1e-5)

    print("KERNEL_OK")
</pallas_src>

<mosaic_0001>
module attributes {stable_mosaic.version = 11 : i64} {
  func.func @_mlp_softmax_kernel(%arg0: i32, %arg1: memref<8x32xf32, #tpu.memory_space<vmem>>, %arg2: memref<32x512xbf16, #tpu.memory_space<vmem>>, %arg3: memref<1x512xf32, #tpu.memory_space<vmem>>, %arg4: memref<512x512xbf16, #tpu.memory_space<vmem>>, %arg5: memref<1x512xf32, #tpu.memory_space<vmem>>, %arg6: memref<512x128xbf16, #tpu.memory_space<vmem>>, %arg7: memref<1x128xf32, #tpu.memory_space<vmem>>, %arg8: memref<8x128xf32, #tpu.memory_space<vmem>>) attributes {dimension_semantics = [#tpu.dimension_semantics<parallel>], iteration_bounds = array<i64: 1>, scalar_prefetch = 0 : i64, scratch_operands = 0 : i64, tpu.core_type = #tpu.core_type<tc>, window_params = [{transform_indices = @transform_0, window_bounds = array<i64: 8, 32>}, {pipeline_mode = #tpu.pipeline_mode<synchronous>, transform_indices = @transform_1, window_bounds = array<i64: 32, 512>}, {pipeline_mode = #tpu.pipeline_mode<synchronous>, transform_indices = @transform_2, window_bounds = array<i64: 1, 512>}, {pipeline_mode = #tpu.pipeline_mode<synchronous>, transform_indices = @transform_3, window_bounds = array<i64: 512, 512>}, {pipeline_mode = #tpu.pipeline_mode<synchronous>, transform_indices = @transform_4, window_bounds = array<i64: 1, 512>}, {pipeline_mode = #tpu.pipeline_mode<synchronous>, transform_indices = @transform_5, window_bounds = array<i64: 512, 128>}, {pipeline_mode = #tpu.pipeline_mode<synchronous>, transform_indices = @transform_6, window_bounds = array<i64: 1, 128>}, {transform_indices = @transform_7, window_bounds = array<i64: 8, 128>}]} {
    %c0 = arith.constant 0 : index
    %c0_0 = arith.constant 0 : index
    %0 = vector.load %arg1[%c0, %c0_0] : memref<8x32xf32, #tpu.memory_space<vmem>>, vector<8x32xf32>
    %1 = arith.truncf %0 : vector<8x32xf32> to vector<8x32xbf16>
    %c0_1 = arith.constant 0 : index
    %c0_2 = arith.constant 0 : index
    %2 = vector.load %arg2[%c0_1, %c0_2] : memref<32x512xbf16, #tpu.memory_space<vmem>>, vector<32x512xbf16>
    %cst = arith.constant dense<0.000000e+00> : vector<8x512xf32>
    %3 = tpu.matmul %1, %2, %cst {dimension_numbers = #tpu.dot_dimension_numbers<[1], [0], [0], [1], [0, 0, 1, 1], [], []>} : vector<8x32xbf16>, vector<32x512xbf16>, vector<8x512xf32> -> vector<8x512xf32>
    %c0_3 = arith.constant 0 : index
    %c0_4 = arith.constant 0 : index
    %4 = vector.load %arg3[%c0_3, %c0_4] : memref<1x512xf32, #tpu.memory_space<vmem>>, vector<1x512xf32>
    %5 = vector.broadcast %4 : vector<1x512xf32> to vector<8x512xf32>
    %6 = arith.addf %3, %5 : vector<8x512xf32>
    %cst_5 = arith.constant 0.000000e+00 : f32
    %7 = vector.broadcast %cst_5 : f32 to vector<8x512xf32>
    %8 = arith.maximumf %6, %7 : vector<8x512xf32>
    %9 = arith.truncf %8 : vector<8x512xf32> to vector<8x512xbf16>
    %c0_6 = arith.constant 0 : index
    %c0_7 = arith.constant 0 : index
    %10 = vector.load %arg4[%c0_6, %c0_7] : memref<512x512xbf16, #tpu.memory_space<vmem>>, vector<512x512xbf16>
    %cst_8 = arith.constant dense<0.000000e+00> : vector<8x512xf32>
    %11 = tpu.matmul %9, %10, %cst_8 {dimension_numbers = #tpu.dot_dimension_numbers<[1], [0], [0], [1], [0, 0, 1, 1], [], []>} : vector<8x512xbf16>, vector<512x512xbf16>, vector<8x512xf32> -> vector<8x512xf32>
    %c0_9 = arith.constant 0 : index
    %c0_10 = arith.constant 0 : index
    %12 = vector.load %arg5[%c0_9, %c0_10] : memref<1x512xf32, #tpu.memory_space<vmem>>, vector<1x512xf32>
    %13 = vector.broadcast %12 : vector<1x512xf32> to vector<8x512xf32>
    %14 = arith.addf %11, %13 : vector<8x512xf32>
    %cst_11 = arith.constant 0.000000e+00 : f32
    %15 = vector.broadcast %cst_11 : f32 to vector<8x512xf32>
    %16 = arith.maximumf %14, %15 : vector<8x512xf32>
    %17 = arith.truncf %16 : vector<8x512xf32> to vector<8x512xbf16>
    %c0_12 = arith.constant 0 : index
    %c0_13 = arith.constant 0 : index
    %18 = vector.load %arg6[%c0_12, %c0_13] : memref<512x128xbf16, #tpu.memory_space<vmem>>, vector<512x128xbf16>
    %cst_14 = arith.constant dense<0.000000e+00> : vector<8x128xf32>
    %19 = tpu.matmul %17, %18, %cst_14 {dimension_numbers = #tpu.dot_dimension_numbers<[1], [0], [0], [1], [0, 0, 1, 1], [], []>} : vector<8x512xbf16>, vector<512x128xbf16>, vector<8x128xf32> -> vector<8x128xf32>
    %c0_15 = arith.constant 0 : index
    %c0_16 = arith.constant 0 : index
    %20 = vector.load %arg7[%c0_15, %c0_16] : memref<1x128xf32, #tpu.memory_space<vmem>>, vector<1x128xf32>
    %21 = vector.broadcast %20 : vector<1x128xf32> to vector<8x128xf32>
    %22 = arith.addf %19, %21 : vector<8x128xf32>
    %cst_17 = arith.constant dense<0xFF800000> : vector<8xf32>
    %23 = vector.multi_reduction <maximumf>, %22, %cst_17 [1] : vector<8x128xf32> to vector<8xf32>
    %24 = vector.shape_cast %23 : vector<8xf32> to vector<8x1xf32>
    %25 = vector.broadcast %24 : vector<8x1xf32> to vector<8x128xf32>
    %26 = arith.subf %22, %25 : vector<8x128xf32>
    %27 = math.exp %26 : vector<8x128xf32>
    %cst_18 = arith.constant dense<0.000000e+00> : vector<8xf32>
    %28 = vector.multi_reduction <add>, %27, %cst_18 [1] : vector<8x128xf32> to vector<8xf32>
    %29 = vector.shape_cast %28 : vector<8xf32> to vector<8x1xf32>
    %30 = tpu.reciprocal %29 {approx = true} : vector<8x1xf32> -> vector<8x1xf32>
    %31 = arith.mulf %29, %30 : vector<8x1xf32>
    %cst_19 = arith.constant 2.000000e+00 : f32
    %32 = vector.broadcast %cst_19 : f32 to vector<8x1xf32>
    %33 = arith.subf %32, %31 : vector<8x1xf32>
    %34 = arith.mulf %30, %33 : vector<8x1xf32>
    %35 = vector.broadcast %34 : vector<8x1xf32> to vector<8x128xf32>
    %36 = arith.mulf %27, %35 : vector<8x128xf32>
    %c0_20 = arith.constant 0 : index
    %c0_21 = arith.constant 0 : index
    %37 = vector.load %arg8[%c0_20, %c0_21] : memref<8x128xf32, #tpu.memory_space<vmem>>, vector<8x128xf32>
    tpu.vector_store %arg8[%c0_20, %c0_21], %36 {strides = array<i32>} : memref<8x128xf32, #tpu.memory_space<vmem>>, vector<8x128xf32>,
    return
  }
  func.func @transform_0(%arg0: i32) -> (i32, i32) {
    %c0_i32 = arith.constant 0 : i32
    %c0_i32_0 = arith.constant 0 : i32
    return %arg0, %c0_i32 : i32, i32
  }
  func.func @transform_1(%arg0: i32) -> (i32, i32) {
    %c0_i32 = arith.constant 0 : i32
    %c0_i32_0 = arith.constant 0 : i32
    %c0_i32_1 = arith.constant 0 : i32
    return %c0_i32, %c0_i32_0 : i32, i32
  }
  func.func @transform_2(%arg0: i32) -> (i32, i32) {
    %c0_i32 = arith.constant 0 : i32
    %c0_i32_0 = arith.constant 0 : i32
    %c0_i32_1 = arith.constant 0 : i32
    return %c0_i32, %c0_i32_0 : i32, i32
  }
  func.func @transform_3(%arg0: i32) -> (i32, i32) {
    %c0_i32 = arith.constant 0 : i32
    %c0_i32_0 = arith.constant 0 : i32
    %c0_i32_1 = arith.constant 0 : i32
    return %c0_i32, %c0_i32_0 : i32, i32
  }
  func.func @transform_4(%arg0: i32) -> (i32, i32) {
    %c0_i32 = arith.constant 0 : i32
    %c0_i32_0 = arith.constant 0 : i32
    %c0_i32_1 = arith.constant 0 : i32
    return %c0_i32, %c0_i32_0 : i32, i32
  }
  func.func @transform_5(%arg0: i32) -> (i32, i32) {
    %c0_i32 = arith.constant 0 : i32
    %c0_i32_0 = arith.constant 0 : i32
    %c0_i32_1 = arith.constant 0 : i32
    return %c0_i32, %c0_i32_0 : i32, i32
  }
  func.func @transform_6(%arg0: i32) -> (i32, i32) {
    %c0_i32 = arith.constant 0 : i32
    %c0_i32_0 = arith.constant 0 : i32
    %c0_i32_1 = arith.constant 0 : i32
    return %c0_i32, %c0_i32_0 : i32, i32
  }
  func.func @transform_7(%arg0: i32) -> (i32, i32) {
    %c0_i32 = arith.constant 0 : i32
    %c0_i32_0 = arith.constant 0 : i32
    return %arg0, %c0_i32 : i32, i32
  }
}

</mosaic_0001>

<bundles_post_ra>
// kernel: tpu_custom_call.1
= control target key start
LH: loop header
LB: loop body
LE: loop exit
PB: predicated region body
PF: predicated region fallthrough
CT: control target
= control target key end

     0   :  { %12 = vsyncpa [#allocation3], 0  ;;  %s2292_s0 = inlined_call_operand.hbm [shape: f32[8,32], index: 0, kind: input, shape index: {}]   ;;  %s2293_s1 = inlined_call_operand.hbm [shape: bf16[32,512], index: 1, kind: input, shape index: {}]   ;;  %s2294_s2 = inlined_call_operand.hbm [shape: f32[1,512], index: 2, kind: input, shape index: {}]   ;;  %s2295_s3 = inlined_call_operand.hbm [shape: bf16[512,512], index: 3, kind: input, shape index: {}]   ;;  %s2296_s4 = inlined_call_operand.vmem [shape: f32[1,512], index: 4, kind: input, shape index: {}]   ;;  %s2297_s5 = inlined_call_operand.hbm [shape: bf16[512,128], index: 5, kind: input, shape index: {}]   ;;  %s2298_s6 = inlined_call_operand.vmem [shape: f32[1,128], index: 6, kind: input, shape index: {}]   ;;  %s2299_s7 = inlined_call_operand.hbm [shape: f32[8,128], index: 7, kind: output, shape index: {}]  }
   0x1   :  { %13 = vsyncpa [#allocation6], 0 }
   0x2   :  { %14 = vsyncpa [#allocation9], 0 }
   0x3   :  { %15 = vsyncpa [#allocation4], 0  ;;  %s2187_s24 = smov [#allocation5]  }
   0x4   :  { %s31_s25 = sshll.u32 %s2187_s24, 4  ;;  %s32_s25 = int_to_ptr.vmem [resolvable:$true] %s31_s25 }
   0x5   :  { %s2067_s26 = scalar_lea.vmem %s32_s25, 1024  ;;  %p2072_p1 = scmp.lt.s32.totalorder %s32_s25, %s32_s25 }
   0x6   :  { %p2068_p0 = scmp.ne.s32.totalorder %s32_s25, %s2067_s26  ;;  %p2073_p2 = scmp.lt.s32.totalorder %s2067_s26, %s2067_s26 }
   0x8   :  { %p2074_p3 = por %p2073_p2, %p2072_p1 }
   0xa   :  { %p2075_p4 = pnand %p2074_p3, %p2068_p0 }
   0xc   :  { %2078 = shalt.err (!%p2075_p4)
}
   0xd   :  { %s2188_s27 = smov 256   ;;  %s2189_s28 = smov 16  }
   0xe   :  { %37 = dma.hbm_to_vmem [thread:$0]  %s2293_s1, 1024, %s32_s25, [#allocation6], %s2188_s27, %s2188_s27, %s2189_s28  }
   0xf   :  { %s2190_s8 = smov [#allocation8]   ;;  %s2191_s10 = smov [#allocation2]  }
  0x10   :  { %s53_s9 = sshll.u32 %s2190_s8, 4  ;;  %s22_s11 = sshll.u32 %s2191_s10, 4  ;;  %s54_s9 = int_to_ptr.vmem [resolvable:$true] %s53_s9  ;;  %s23_s11 = int_to_ptr.vmem [resolvable:$true] %s22_s11 }
  0x11   :  { %s2087_s12 = scalar_lea.vmem %s54_s9, 16384  ;;  %p2092_p6 = scmp.lt.s32.totalorder %s54_s9, %s54_s9 }
  0x12   :  { %p2088_p5 = scmp.ne.s32.totalorder %s54_s9, %s2087_s12  ;;  %p2093_p7 = scmp.lt.s32.totalorder %s2087_s12, %s2087_s12 }
  0x14   :  { %p2094_p8 = por %p2093_p7, %p2092_p6 }
  0x16   :  { %p2095_p9 = pnand %p2094_p8, %p2088_p5 }
  0x18   :  { %2098 = shalt.err (!%p2095_p9)
}
  0x19   :  { %59 = dma.hbm_to_vmem [thread:$0]  %s2295_s3, 16384, %s54_s9, [#allocation9], %s2188_s27, %s2188_s27, %s2189_s28  }
  0x1a   :  { %s2107_s15 = scalar_lea.vmem %s23_s11, 128  ;;  %p2112_p11 = scmp.lt.s32.totalorder %s23_s11, %s23_s11 }
  0x1b   :  { %p2108_p10 = scmp.ne.s32.totalorder %s23_s11, %s2107_s15  ;;  %p2113_p12 = scmp.lt.s32.totalorder %s2107_s15, %s2107_s15 }
  0x1d   :  { %p2114_p13 = por %p2113_p12, %p2112_p11 }
  0x1f   :  { %p2115_p0 = pnand %p2114_p13, %p2108_p10 }
  0x21   :  { %2118 = shalt.err (!%p2115_p0)
}
  0x22   :  { %25 = dma.hbm_to_vmem [thread:$0]  %s2292_s0, 128, %s23_s11, [#allocation3]  }
  0x23   :  { %s2192_s17 = smov [#allocation7]   ;;  %s2193_s19 = smov [#allocation10]  }
  0x24   :  { %s44_s18 = sshll.u32 %s2192_s17, 4  ;;  %s67_s20 = sshll.u32 %s2193_s19, 4  ;;  %s45_s18 = int_to_ptr.vmem [resolvable:$true] %s44_s18  ;;  %s68_s20 = int_to_ptr.vmem [resolvable:$true] %s67_s20 }
  0x25   :  { %s2127_s21 = scalar_lea.vmem %s45_s18, 64  ;;  %p2132_p2 = scmp.lt.s32.totalorder %s45_s18, %s45_s18 }
  0x26   :  { %p2128_p1 = scmp.ne.s32.totalorder %s45_s18, %s2127_s21  ;;  %p2133_p3 = scmp.lt.s32.totalorder %s2127_s21, %s2127_s21 }
  0x28   :  { %p2134_p4 = por %p2133_p3, %p2132_p2 }
  0x2a   :  { %p2135_p5 = pnand %p2134_p4, %p2128_p1 }
  0x2c   :  { %2138 = shalt.err (!%p2135_p5)
}
  0x2d   :  { %47 = dma.hbm_to_vmem [thread:$0]  %s2294_s2, 64, %s45_s18, [#allocation6]  }
  0x2e   :  { %s2147_s23 = scalar_lea.vmem %s68_s20, 4096  ;;  %p2152_p7 = scmp.lt.s32.totalorder %s68_s20, %s68_s20 }
  0x2f   :  { %p2148_p6 = scmp.ne.s32.totalorder %s68_s20, %s2147_s23  ;;  %p2153_p8 = scmp.lt.s32.totalorder %s2147_s23, %s2147_s23 }
  0x31   :  { %p2154_p9 = por %p2153_p8, %p2152_p7 }
  0x33   :  { %p2155_p10 = pnand %p2154_p9, %p2148_p6 }
  0x35   :  { %2158 = shalt.err (!%p2155_p10)
}
  0x36   :  { %s2194_s0 = smov 64   ;;  %s2195_s24 = smov 4  }
  0x37   :  { %73 = dma.hbm_to_vmem [thread:$0]  %s2297_s5, 4096, %s68_s20, [#allocation9], %s2194_s0, %s2194_s0, %s2195_s24  }
  0x38   :  { %2179 = dma.done.wait [#allocation3], 128  }
  0x39   :  { %2180 = vsyncadd [#allocation3], 4294967168 }
  0x3a   :  { %2181 = dma.done.wait [#allocation6], 1088  }
  0x3b   :  { %2182 = vsyncadd [#allocation6], 4294966208 }
  0x3c   :  { %2183 = dma.done.wait [#allocation9], 20480  }
  0x3d   :  { %2184 = vsyncadd [#allocation9], 4294946816  ;;  %v2196_v0 = vmov 0   ;;  %v1819_v1 = vld [vmem:[#allocation5 + $0x24] ss:$16 sps:$4 sm:$0xff]   ;;  %v92_v9 = vld [vmem:[#allocation2] sm:$0xff] }
  0x3e   :  { %200 = vmatprep.mubr.bf16.mxu0 %v2196_v0  ;;  %241 = vmatprep.mubr.bf16.mxu1 %v2196_v0  ;;  %v1821_v2 = vld [vmem:[#allocation5 + $0x2c] ss:$16 sps:$4 sm:$0xff]   ;;  %v1823_v3 = vld [vmem:[#allocation5 + $0x20] ss:$16 sps:$4 sm:$0xff]   ;;  %v1824_v4 = vld [vmem:[#allocation5 + $0x28] ss:$16 sps:$4 sm:$0xff]   ;;  %v93_v12 = vpack.c.bf16 %v92_v9, %v92_v9 }
  0x3f   :  { %180 = vmatprep.subr.bf16.mxu0 %v1819_v1  ;;  %221 = vmatprep.subr.bf16.mxu1 %v1821_v2  ;;  %v1825_v5 = vld [vmem:[#allocation5 + $0x4] ss:$16 sps:$4 sm:$0xff]   ;;  %v1827_v6 = vld [vmem:[#allocation5 + $0xc] ss:$16 sps:$4 sm:$0xff]   ;;  %v1829_v7 = vld [vmem:[#allocation5] ss:$16 sps:$4 sm:$0xff]  }
  0x40   :  { %181 = vmatpush1.bf16.msra.mxu0 %v1823_v3  ;;  %222 = vmatpush1.bf16.msra.mxu1 %v1824_v4  ;;  %v1830_v8 = vld [vmem:[#allocation5 + $0x8] ss:$16 sps:$4 sm:$0xff]   ;;  %v1831_v10 = vld [vmem:[#allocation8 + $0xe0] ss:$16 sps:$4 sm:$0xff]   ;;  %vm164_vm0 = vcmask 261120  }
  0x41   :  { %182 = vmatprep.subr.bf16.mxu0 %v1825_v5  ;;  %223 = vmatprep.subr.bf16.mxu1 %v1827_v6  ;;  %v1833_v11 = vld [vmem:[#allocation8 + $0xe4] ss:$16 sps:$4 sm:$0xff]   ;;  %v1834_v13 = vld [vmem:[#allocation8 + $0x2e0] ss:$16 sps:$4 sm:$0xff]  }
  0x42   :  { %v1836_v14 = vld [vmem:[#allocation8 + $0x2e4] ss:$16 sps:$4 sm:$0xff]   ;;  %v1837_v17 = vld [vmem:[#allocation8 + $0xc0] ss:$16 sps:$4 sm:$0xff]  }
  0x43   :  { %v1839_v15 = vld [vmem:[#allocation8 + $0xc4] ss:$16 sps:$4 sm:$0xff]   ;;  %v1840_v18 = vld [vmem:[#allocation8 + $0x2c0] ss:$16 sps:$4 sm:$0xff]  }
  0x44   :  { %183 = vmatpush1.bf16.msra.mxu0 %v1829_v7  ;;  %224 = vmatpush1.bf16.msra.mxu1 %v1830_v8  ;;  %v1842_v16 = vld [vmem:[#allocation8 + $0x2c4] ss:$16 sps:$4 sm:$0xff]   ;;  %v1843_v21 = vld [vmem:[#allocation8 + $0xa0] ss:$16 sps:$4 sm:$0xff]  }
  0x45   :  { %1048 = vmatprep.subr.bf16.mxu0 %v1833_v11  ;;  %1089 = vmatprep.subr.bf16.mxu1 %v1836_v14  ;;  %v1845_v19 = vld [vmem:[#allocation8 + $0xa4] ss:$16 sps:$4 sm:$0xff]   ;;  %v1846_v22 = vld [vmem:[#allocation8 + $0x2a0] ss:$16 sps:$4 sm:$0xff]   ;;  %v1929_v11 = vld [vmem:[#allocation8 + $0xec] ss:$16 sps:$4 sm:$0xff]  }
  0x46   :  { %v1848_v20 = vld [vmem:[#allocation8 + $0x2a4] ss:$16 sps:$4 sm:$0xff]   ;;  %v1849_v25 = vld [vmem:[#allocation8 + $0x80] ss:$16 sps:$4 sm:$0xff]  }
  0x47   :  { %1601 = vmatmul.mubr.msk.bf16.vlgmr.msra.gmra.mxu0 %vm164_vm0, %v93_v12  ;;  %1602 = vmatmul.mubr.msk.bf16.vlgmr.msra.gmra.mxu1 %vm164_vm0, %v93_v12  ;;  %v1851_v23 = vld [vmem:[#allocation8 + $0x84] ss:$16 sps:$4 sm:$0xff]   ;;  %v1852_v26 = vld [vmem:[#allocation8 + $0x280] ss:$16 sps:$4 sm:$0xff]   ;;  %v1932_v12 = vld [vmem:[#allocation8 + $0x2ec] ss:$16 sps:$4 sm:$0xff]  }
  0x48   :  { %1049 = vmatpush1.bf16.msra.mxu0 %v1831_v10  ;;  %1090 = vmatpush1.bf16.msra.mxu1 %v1834_v13  ;;  %v1854_v24 = vld [vmem:[#allocation8 + $0x284] ss:$16 sps:$4 sm:$0xff]   ;;  %v1855_v29 = vld [vmem:[#allocation8 + $0x60] ss:$16 sps:$4 sm:$0xff]   ;;  %v104_v13 = vlaneseq }
  0x49   :  { %1050 = vmatprep.subr.bf16.mxu0 %v1839_v15  ;;  %1091 = vmatprep.subr.bf16.mxu1 %v1842_v16  ;;  %v1857_v27 = vld [vmem:[#allocation8 + $0x64] ss:$16 sps:$4 sm:$0xff]   ;;  %v1858_v30 = vld [vmem:[#allocation8 + $0x260] ss:$16 sps:$4 sm:$0xff]  }
  0x4a   :  { %v1860_v28 = vld [vmem:[#allocation8 + $0x264] ss:$16 sps:$4 sm:$0xff]   ;;  %v1861_v33 = vld [vmem:[#allocation8 + $0x40] ss:$16 sps:$4 sm:$0xff]   ;;  %v2253_v14 = vshrl.u32 %v104_v13, 7 }
  0x4b   :  { %v1863_v31 = vld [vmem:[#allocation8 + $0x44] ss:$16 sps:$4 sm:$0xff]   ;;  %v1864_v34 = vld [vmem:[#allocation8 + $0x240] ss:$16 sps:$4 sm:$0xff]   ;;  %v1978_v13 = vld [vmem:[#allocation8 + $0x3e8] ss:$16 sps:$4 sm:$0xff]  }
  0x4c   :  { %1051 = vmatpush1.bf16.msra.mxu0 %v1837_v17  ;;  %1092 = vmatpush1.bf16.msra.mxu1 %v1840_v18  ;;  %v1866_v32 = vld [vmem:[#allocation8 + $0x244] ss:$16 sps:$4 sm:$0xff]   ;;  %v1867_v37 = vld [vmem:[#allocation8 + $0x20] ss:$16 sps:$4 sm:$0xff]   ;;  %v106_v15 = vsub.s32 0, %v2253_v14  ;;  %v114_v16 = vsub.s32 2, %v2253_v14 }
  0x4d   :  { %1052 = vmatprep.subr.bf16.mxu0 %v1845_v19  ;;  %1093 = vmatprep.subr.bf16.mxu1 %v1848_v20  ;;  %v1869_v35 = vld [vmem:[#allocation8 + $0x24] ss:$16 sps:$4 sm:$0xff]   ;;  %v1870_v38 = vld [vmem:[#allocation8 + $0x220] ss:$16 sps:$4 sm:$0xff]   ;;  %v102_v17 = vld [vmem:[#allocation7] sm:$0xf] }
  0x4e   :  { %v1872_v36 = vld [vmem:[#allocation8 + $0x224] ss:$16 sps:$4 sm:$0xff]   ;;  %v1873_v41 = vld [vmem:[#allocation8] ss:$16 sps:$4 sm:$0xff]   ;;  %v110_v18 = vsub.s32 1, %v2253_v14  ;;  %v118_v19 = vsub.s32 3, %v2253_v14  ;;  %v107_v20 = vrot.slane %v102_v17, %v106_v15 }
  0x4f   :  { %v1875_v39 = vld [vmem:[#allocation8 + $0x4] ss:$16 sps:$4 sm:$0xff]   ;;  %v1876_v42 = vld [vmem:[#allocation8 + $0x200] ss:$16 sps:$4 sm:$0xff]  }
  0x50   :  { %1053 = vmatpush1.bf16.msra.mxu0 %v1843_v21  ;;  %1094 = vmatpush1.bf16.msra.mxu1 %v1846_v22  ;;  %v1878_v40 = vld [vmem:[#allocation8 + $0x204] ss:$16 sps:$4 sm:$0xff]   ;;  %v1879_v45 = vld [vmem:[#allocation8 + $0x1e0] ss:$16 sps:$4 sm:$0xff]   ;;  %v115_v21 = vrot.slane %v102_v17, %v114_v16  ;;  %v111_v22 = vrot.slane %v102_v17, %v110_v18 }
  0x51   :  { %1054 = vmatprep.subr.bf16.mxu0 %v1851_v23  ;;  %1095 = vmatprep.subr.bf16.mxu1 %v1854_v24  ;;  %v1881_v43 = vld [vmem:[#allocation8 + $0x1e4] ss:$16 sps:$4 sm:$0xff]   ;;  %v1882_v46 = vld [vmem:[#allocation8 + $0x3e0] ss:$16 sps:$4 sm:$0xff]   ;;  %v119_v23 = vrot.slane %v102_v17, %v118_v19  ;;  %v1983_v17 = vld [vmem:[#allocation8 + $0x1cc] ss:$16 sps:$4 sm:$0xff]  }
  0x52   :  { %v1884_v44 = vld [vmem:[#allocation8 + $0x3e4] ss:$16 sps:$4 sm:$0xff]   ;;  %v1885_v49 = vld [vmem:[#allocation8 + $0x1c0] ss:$16 sps:$4 sm:$0xff]  }
  0x53   :  { %v1887_v47 = vld [vmem:[#allocation8 + $0x1c4] ss:$16 sps:$4 sm:$0xff]   ;;  %v1888_v50 = vld [vmem:[#allocation8 + $0x3c0] ss:$16 sps:$4 sm:$0xff]  }
  0x54   :  { %1055 = vmatpush1.bf16.msra.mxu0 %v1849_v25  ;;  %1096 = vmatpush1.bf16.msra.mxu1 %v1852_v26  ;;  %v1890_v48 = vld [vmem:[#allocation8 + $0x3c4] ss:$16 sps:$4 sm:$0xff]   ;;  %v1891_v53 = vld [vmem:[#allocation8 + $0x1a0] ss:$16 sps:$4 sm:$0xff]  }
  0x55   :  { %1056 = vmatprep.subr.bf16.mxu0 %v1857_v27  ;;  %1097 = vmatprep.subr.bf16.mxu1 %v1860_v28  ;;  %v1893_v51 = vld [vmem:[#allocation8 + $0x1a4] ss:$16 sps:$4 sm:$0xff]   ;;  %v1894_v54 = vld [vmem:[#allocation8 + $0x3a0] ss:$16 sps:$4 sm:$0xff]  }
  0x56   :  { %v1896_v52 = vld [vmem:[#allocation8 + $0x3a4] ss:$16 sps:$4 sm:$0xff]   ;;  %v1897_v57 = vld [vmem:[#allocation8 + $0x180] ss:$16 sps:$4 sm:$0xff]  }
  0x57   :  { %v1899_v55 = vld [vmem:[#allocation8 + $0x184] ss:$16 sps:$4 sm:$0xff]   ;;  %v1900_v58 = vld [vmem:[#allocation8 + $0x380] ss:$16 sps:$4 sm:$0xff]  }
  0x58   :  { %1057 = vmatpush1.bf16.msra.mxu0 %v1855_v29  ;;  %1098 = vmatpush1.bf16.msra.mxu1 %v1858_v30  ;;  %v1902_v56 = vld [vmem:[#allocation8 + $0x384] ss:$16 sps:$4 sm:$0xff]   ;;  %v1903_v61 = vld [vmem:[#allocation8 + $0x160] ss:$16 sps:$4 sm:$0xff]  }
  0x59   :  { %1058 = vmatprep.subr.bf16.mxu0 %v1863_v31  ;;  %1099 = vmatprep.subr.bf16.mxu1 %v1866_v32  ;;  %v1905_v59 = vld [vmem:[#allocation8 + $0x164] ss:$16 sps:$4 sm:$0xff]   ;;  %v1906_v62 = vld [vmem:[#allocation8 + $0x360] ss:$16 sps:$4 sm:$0xff]  }
  0x5a   :  { %v1908_v60 = vld [vmem:[#allocation8 + $0x364] ss:$16 sps:$4 sm:$0xff]   ;;  %v1909_v1 = vld [vmem:[#allocation8 + $0x140] ss:$16 sps:$4 sm:$0xff]  }
  0x5b   :  { %v1911_v63 = vld [vmem:[#allocation8 + $0x144] ss:$16 sps:$4 sm:$0xff]   ;;  %v1912_v2 = vld [vmem:[#allocation8 + $0x340] ss:$16 sps:$4 sm:$0xff]  }
  0x5c   :  { %1059 = vmatpush1.bf16.msra.mxu0 %v1861_v33  ;;  %1100 = vmatpush1.bf16.msra.mxu1 %v1864_v34  ;;  %v1914_v0 = vld [vmem:[#allocation8 + $0x344] ss:$16 sps:$4 sm:$0xff]   ;;  %v1915_v5 = vld [vmem:[#allocation8 + $0x120] ss:$16 sps:$4 sm:$0xff]  }
  0x5d   :  { %1060 = vmatprep.subr.bf16.mxu0 %v1869_v35  ;;  %1101 = vmatprep.subr.bf16.mxu1 %v1872_v36  ;;  %v1917_v3 = vld [vmem:[#allocation8 + $0x124] ss:$16 sps:$4 sm:$0xff]   ;;  %v1918_v6 = vld [vmem:[#allocation8 + $0x320] ss:$16 sps:$4 sm:$0xff]  }
  0x5e   :  { %v1920_v4 = vld [vmem:[#allocation8 + $0x324] ss:$16 sps:$4 sm:$0xff]   ;;  %v1921_v9 = vld [vmem:[#allocation8 + $0x100] ss:$16 sps:$4 sm:$0xff]  }
  0x5f   :  { %v1923_v7 = vld [vmem:[#allocation8 + $0x104] ss:$16 sps:$4 sm:$0xff]   ;;  %v1924_v10 = vld [vmem:[#allocation8 + $0x300] ss:$16 sps:$4 sm:$0xff]  }
  0x60   :  { %1061 = vmatpush1.bf16.msra.mxu0 %v1867_v37  ;;  %1102 = vmatpush1.bf16.msra.mxu1 %v1870_v38  ;;  %v1926_v8 = vld [vmem:[#allocation8 + $0x304] ss:$16 sps:$4 sm:$0xff]  }
  0x61   :  { %1062 = vmatprep.subr.bf16.mxu0 %v1875_v39  ;;  %1103 = vmatprep.subr.bf16.mxu1 %v1878_v40 }
  0x64   :  { %1063 = vmatpush1.bf16.msra.mxu0 %v1873_v41  ;;  %1104 = vmatpush1.bf16.msra.mxu1 %v1876_v42 }
  0x65   :  { %1064 = vmatprep.subr.bf16.mxu0 %v1881_v43  ;;  %1105 = vmatprep.subr.bf16.mxu1 %v1884_v44  ;;  %v1927_v43 = vld [vmem:[#allocation8 + $0xe8] ss:$16 sps:$4 sm:$0xff]  }
  0x66   :  { %v1930_v44 = vld [vmem:[#allocation8 + $0x2e8] ss:$16 sps:$4 sm:$0xff]  }
  0x68   :  { %1065 = vmatpush2.bf16.msra.mxu0 %v1879_v45  ;;  %1106 = vmatpush2.bf16.msra.mxu1 %v1882_v46  ;;  %v1935_v46 = vld [vmem:[#allocation8 + $0xcc] ss:$16 sps:$4 sm:$0xff]  }
  0x69   :  { %1066 = vmatprep.subr.bf16.mxu0 %v1887_v47  ;;  %1107 = vmatprep.subr.bf16.mxu1 %v1890_v48  ;;  %v1938_v47 = vld [vmem:[#allocation8 + $0x2cc] ss:$16 sps:$4 sm:$0xff]   ;;  %v1933_v48 = vld [vmem:[#allocation8 + $0xc8] ss:$16 sps:$4 sm:$0xff]  }
  0x6c   :  { %1067 = vmatpush2.bf16.msra.mxu0 %v1885_v49  ;;  %1108 = vmatpush2.bf16.msra.mxu1 %v1888_v50  ;;  %v1936_v49 = vld [vmem:[#allocation8 + $0x2c8] ss:$16 sps:$4 sm:$0xff]   ;;  %v1941_v50 = vld [vmem:[#allocation8 + $0xac] ss:$16 sps:$4 sm:$0xff]  }
  0x6d   :  { %1068 = vmatprep.subr.bf16.mxu0 %v1893_v51  ;;  %1109 = vmatprep.subr.bf16.mxu1 %v1896_v52  ;;  %v1944_v51 = vld [vmem:[#allocation8 + $0x2ac] ss:$16 sps:$4 sm:$0xff]   ;;  %v1939_v52 = vld [vmem:[#allocation8 + $0xa8] ss:$16 sps:$4 sm:$0xff]  }
  0x70   :  { %1069 = vmatpush2.bf16.msra.mxu0 %v1891_v53  ;;  %1110 = vmatpush2.bf16.msra.mxu1 %v1894_v54  ;;  %v1942_v53 = vld [vmem:[#allocation8 + $0x2a8] ss:$16 sps:$4 sm:$0xff]   ;;  %v1947_v54 = vld [vmem:[#allocation8 + $0x8c] ss:$16 sps:$4 sm:$0xff]  }
  0x71   :  { %1070 = vmatprep.subr.bf16.mxu0 %v1899_v55  ;;  %1111 = vmatprep.subr.bf16.mxu1 %v1902_v56  ;;  %v1950_v55 = vld [vmem:[#allocation8 + $0x28c] ss:$16 sps:$4 sm:$0xff]   ;;  %v1945_v56 = vld [vmem:[#allocation8 + $0x88] ss:$16 sps:$4 sm:$0xff]  }
  0x74   :  { %1071 = vmatpush2.bf16.msra.mxu0 %v1897_v57  ;;  %1112 = vmatpush2.bf16.msra.mxu1 %v1900_v58  ;;  %v1948_v57 = vld [vmem:[#allocation8 + $0x288] ss:$16 sps:$4 sm:$0xff]   ;;  %v1953_v58 = vld [vmem:[#allocation8 + $0x6c] ss:$16 sps:$4 sm:$0xff]  }
  0x75   :  { %1072 = vmatprep.subr.bf16.mxu0 %v1905_v59  ;;  %1113 = vmatprep.subr.bf16.mxu1 %v1908_v60  ;;  %v1956_v59 = vld [vmem:[#allocation8 + $0x26c] ss:$16 sps:$4 sm:$0xff]   ;;  %v1951_v60 = vld [vmem:[#allocation8 + $0x68] ss:$16 sps:$4 sm:$0xff]  }
  0x78   :  { %1073 = vmatpush2.bf16.msra.mxu0 %v1903_v61  ;;  %1114 = vmatpush2.bf16.msra.mxu1 %v1906_v62  ;;  %v1954_v61 = vld [vmem:[#allocation8 + $0x268] ss:$16 sps:$4 sm:$0xff]   ;;  %v1959_v62 = vld [vmem:[#allocation8 + $0x4c] ss:$16 sps:$4 sm:$0xff]  }
  0x79   :  { %1074 = vmatprep.subr.bf16.mxu0 %v1911_v63  ;;  %1115 = vmatprep.subr.bf16.mxu1 %v1914_v0  ;;  %v1962_v63 = vld [vmem:[#allocation8 + $0x24c] ss:$16 sps:$4 sm:$0xff]   ;;  %v1957_v0 = vld [vmem:[#allocation8 + $0x48] ss:$16 sps:$4 sm:$0xff]  }
  0x7c   :  { %1075 = vmatpush2.bf16.msra.mxu0 %v1909_v1  ;;  %1116 = vmatpush2.bf16.msra.mxu1 %v1912_v2  ;;  %v1960_v1 = vld [vmem:[#allocation8 + $0x248] ss:$16 sps:$4 sm:$0xff]   ;;  %v1965_v2 = vld [vmem:[#allocation8 + $0x2c] ss:$16 sps:$4 sm:$0xff]  }
  0x7d   :  { %1076 = vmatprep.subr.bf16.mxu0 %v1917_v3  ;;  %1117 = vmatprep.subr.bf16.mxu1 %v1920_v4  ;;  %v1968_v3 = vld [vmem:[#allocation8 + $0x22c] ss:$16 sps:$4 sm:$0xff]   ;;  %v1963_v4 = vld [vmem:[#allocation8 + $0x28] ss:$16 sps:$4 sm:$0xff]  }
  0x80   :  { %1077 = vmatpush2.bf16.msra.mxu0 %v1915_v5  ;;  %1118 = vmatpush2.bf16.msra.mxu1 %v1918_v6  ;;  %v1966_v5 = vld [vmem:[#allocation8 + $0x228] ss:$16 sps:$4 sm:$0xff]   ;;  %v1971_v6 = vld [vmem:[#allocation8 + $0xc] ss:$16 sps:$4 sm:$0xff]  }
  0x81   :  { %1078 = vmatprep.subr.bf16.mxu0 %v1923_v7  ;;  %1119 = vmatprep.subr.bf16.mxu1 %v1926_v8  ;;  %v1974_v7 = vld [vmem:[#allocation8 + $0x20c] ss:$16 sps:$4 sm:$0xff]   ;;  %v1969_v8 = vld [vmem:[#allocation8 + $0x8] ss:$16 sps:$4 sm:$0xff]  }
  0x84   :  { %1079 = vmatpush2.bf16.msra.mxu0 %v1921_v9  ;;  %1120 = vmatpush2.bf16.msra.mxu1 %v1924_v10  ;;  %v1972_v9 = vld [vmem:[#allocation8 + $0x208] ss:$16 sps:$4 sm:$0xff]   ;;  %v1977_v10 = vld [vmem:[#allocation8 + $0x1ec] ss:$16 sps:$4 sm:$0xff]  }
  0x85   :  { %1130 = vmatprep.subr.bf16.mxu0 %v1929_v11  ;;  %1171 = vmatprep.subr.bf16.mxu1 %v1932_v12  ;;  %v1980_v11 = vld [vmem:[#allocation8 + $0x3ec] ss:$16 sps:$4 sm:$0xff]   ;;  %v1975_v12 = vld [vmem:[#allocation8 + $0x1e8] ss:$16 sps:$4 sm:$0xff]  }
 0x107   :  { %v202_v24 = vpop.f32.mrf.mxu0  ;;  %v243_v25 = vpop.f32.mrf.mxu1 }
 0x108   :  { %v203_v26 = vadd.f32 %v202_v24, %v107_v20  ;;  %v244_v27 = vadd.f32 %v243_v25, %v115_v21  ;;  %v1986_v20 = vld [vmem:[#allocation8 + $0x3cc] ss:$16 sps:$4 sm:$0xff]   ;;  %v1981_v21 = vld [vmem:[#allocation8 + $0x1c8] ss:$16 sps:$4 sm:$0xff]  }
 0x109   :  { %v204_v28 = vpop.f32.mrf.mxu0  ;;  %v245_v29 = vpop.f32.mrf.mxu1  ;;  %v1992_v24 = vld [vmem:[#allocation8 + $0x3ac] ss:$16 sps:$4 sm:$0xff]   ;;  %v1987_v25 = vld [vmem:[#allocation8 + $0x1a8] ss:$16 sps:$4 sm:$0xff]  }
 0x10a   :  { %v252_v30 = vmax.f32 %v244_v27, 0.0  ;;  %v205_v31 = vadd.f32 %v204_v28, %v111_v22  ;;  %v246_v32 = vadd.f32 %v245_v29, %v119_v23  ;;  %v250_v33 = vmax.f32 %v203_v26, 0.0  ;;  %v1984_v22 = vld [vmem:[#allocation8 + $0x3c8] ss:$16 sps:$4 sm:$0xff]   ;;  %v1989_v23 = vld [vmem:[#allocation8 + $0x1ac] ss:$16 sps:$4 sm:$0xff]  }
 0x10b   :  { %v206_v34 = vpop.f32.mrf.mxu0  ;;  %v247_v35 = vpop.f32.mrf.mxu1  ;;  %v1990_v26 = vld [vmem:[#allocation8 + $0x3a8] ss:$16 sps:$4 sm:$0xff]   ;;  %v1995_v27 = vld [vmem:[#allocation8 + $0x18c] ss:$16 sps:$4 sm:$0xff]  }
 0x10c   :  { %v251_v36 = vmax.f32 %v205_v31, 0.0  ;;  %v253_v37 = vmax.f32 %v246_v32, 0.0  ;;  %v2267_v38 = vpack.c.bf16 %v252_v30, %v252_v30  ;;  %v2269_v45 = vpack.c.bf16 %v250_v33, %v250_v33  ;;  %v1998_v28 = vld [vmem:[#allocation8 + $0x38c] ss:$16 sps:$4 sm:$0xff]   ;;  %v1993_v29 = vld [vmem:[#allocation8 + $0x188] ss:$16 sps:$4 sm:$0xff]  }
 0x10d   :  { %v207_v39 = vpop.f32.mrf.mxu0  ;;  %v248_v40 = vpop.f32.mrf.mxu1  ;;  %v1996_v30 = vld [vmem:[#allocation8 + $0x388] ss:$16 sps:$4 sm:$0xff]   ;;  %v2001_v31 = vld [vmem:[#allocation8 + $0x16c] ss:$16 sps:$4 sm:$0xff]  }
 0x10e   :  { %v255_v41 = vpack.c.bf16 %v251_v36, %v251_v36  ;;  %v257_v42 = vpack.c.bf16 %v253_v37, %v253_v37  ;;  %v2004_v32 = vld [vmem:[#allocation8 + $0x36c] ss:$16 sps:$4 sm:$0xff]   ;;  %v1999_v33 = vld [vmem:[#allocation8 + $0x168] ss:$16 sps:$4 sm:$0xff]  }
 0x10f   :  { %v2002_v34 = vld [vmem:[#allocation8 + $0x368] ss:$16 sps:$4 sm:$0xff]   ;;  %v2007_v35 = vld [vmem:[#allocation8 + $0x14c] ss:$16 sps:$4 sm:$0xff]  }
 0x110   :  { %1080 = vmatprep.mubr.bf16.mxu0 %v255_v41  ;;  %1121 = vmatprep.mubr.bf16.mxu1 %v257_v42  ;;  %v2010_v36 = vld [vmem:[#allocation8 + $0x34c] ss:$16 sps:$4 sm:$0xff]   ;;  %v2005_v37 = vld [vmem:[#allocation8 + $0x148] ss:$16 sps:$4 sm:$0xff]  }
 0x111   :  { %1081 = vmatmul.mubr.bf16.vlgmr.msra.gmra.mxu0 %v2269_v45  ;;  %1122 = vmatmul.mubr.bf16.vlgmr.msra.gmra.mxu1 %v2267_v38  ;;  %v2008_v39 = vld [vmem:[#allocation8 + $0x348] ss:$16 sps:$4 sm:$0xff]   ;;  %v2013_v40 = vld [vmem:[#allocation8 + $0x12c] ss:$16 sps:$4 sm:$0xff]  }
 0x112   :  { %1131 = vmatpush1.bf16.msra.mxu0 %v1927_v43  ;;  %1172 = vmatpush1.bf16.msra.mxu1 %v1930_v44  ;;  %v2014_v43 = vld [vmem:[#allocation8 + $0x328] ss:$16 sps:$4 sm:$0xff]   ;;  %v2019_v44 = vld [vmem:[#allocation8 + $0x10c] ss:$16 sps:$4 sm:$0xff]  }
 0x113   :  { %1162 = vmatprep.mubr.bf16.mxu0 %v255_v41  ;;  %1203 = vmatprep.mubr.bf16.mxu1 %v257_v42  ;;  %v2016_v41 = vld [vmem:[#allocation8 + $0x32c] ss:$16 sps:$4 sm:$0xff]   ;;  %v2011_v42 = vld [vmem:[#allocation8 + $0x128] ss:$16 sps:$4 sm:$0xff]  }
 0x114   :  { %1132 = vmatprep.subr.bf16.mxu0 %v1935_v46  ;;  %1173 = vmatprep.subr.bf16.mxu1 %v1938_v47  ;;  %v2022_v46 = vld [vmem:[#allocation8 + $0x30c] ss:$16 sps:$4 sm:$0xff]   ;;  %v2017_v47 = vld [vmem:[#allocation8 + $0x108] ss:$16 sps:$4 sm:$0xff]  }
 0x116   :  { %1133 = vmatpush1.bf16.msra.mxu0 %v1933_v48  ;;  %1174 = vmatpush1.bf16.msra.mxu1 %v1936_v49  ;;  %v2020_v48 = vld [vmem:[#allocation8 + $0x308] ss:$16 sps:$4 sm:$0xff]  }
 0x117   :  { %1134 = vmatprep.subr.bf16.mxu0 %v1941_v50  ;;  %1175 = vmatprep.subr.bf16.mxu1 %v1944_v51  ;;  %v2023_v49 = vld [vmem:[#allocation10 + $0x78] sm:$0xff]   ;;  %v2025_v51 = vld [vmem:[#allocation10 + $0x70] sm:$0xff]  }
 0x118   :  { %v2024_v50 = vld [vmem:[#allocation10 + $0x38] sm:$0xff]  }
 0x11a   :  { %1135 = vmatpush1.bf16.msra.mxu0 %v1939_v52  ;;  %1176 = vmatpush1.bf16.msra.mxu1 %v1942_v53  ;;  %v2026_v52 = vld [vmem:[#allocation10 + $0x30] sm:$0xff]   ;;  %v2027_v53 = vld [vmem:[#allocation10 + $0x68] sm:$0xff]  }
 0x11b   :  { %1136 = vmatprep.subr.bf16.mxu0 %v1947_v54  ;;  %1177 = vmatprep.subr.bf16.mxu1 %v1950_v55  ;;  %v2028_v54 = vld [vmem:[#allocation10 + $0x28] sm:$0xff]   ;;  %v2029_v55 = vld [vmem:[#allocation10 + $0x60] sm:$0xff]  }
 0x11e   :  { %1137 = vmatpush1.bf16.msra.mxu0 %v1945_v56  ;;  %1178 = vmatpush1.bf16.msra.mxu1 %v1948_v57  ;;  %v2030_v56 = vld [vmem:[#allocation10 + $0x20] sm:$0xff]   ;;  %v2031_v57 = vld [vmem:[#allocation10 + $0x58] sm:$0xff]  }
 0x11f   :  { %1138 = vmatprep.subr.bf16.mxu0 %v1953_v58  ;;  %1179 = vmatprep.subr.bf16.mxu1 %v1956_v59  ;;  %v2039_v58 = vld [vmem:[#allocation10 + $0xf8] sm:$0xff]  }
 0x120   :  { %v2040_v59 = vld [vmem:[#allocation10 + $0xb8] sm:$0xff]  }
 0x122   :  { %1139 = vmatpush1.bf16.msra.mxu0 %v1951_v60  ;;  %1180 = vmatpush1.bf16.msra.mxu1 %v1954_v61  ;;  %v2041_v60 = vld [vmem:[#allocation10 + $0xf0] sm:$0xff]   ;;  %v2032_v61 = vld [vmem:[#allocation10 + $0x18] sm:$0xff]  }
 0x123   :  { %1140 = vmatprep.subr.bf16.mxu0 %v1959_v62  ;;  %1181 = vmatprep.subr.bf16.mxu1 %v1962_v63  ;;  %v2043_v62 = vld [vmem:[#allocation10 + $0xe8] sm:$0xff]   ;;  %v2034_v63 = vld [vmem:[#allocation10 + $0x10] sm:$0xff]  }
 0x126   :  { %1141 = vmatpush1.bf16.msra.mxu0 %v1957_v0  ;;  %1182 = vmatpush1.bf16.msra.mxu1 %v1960_v1  ;;  %v2035_v0 = vld [vmem:[#allocation10 + $0x48] sm:$0xff]  }
 0x127   :  { %1142 = vmatprep.subr.bf16.mxu0 %v1965_v2  ;;  %1183 = vmatprep.subr.bf16.mxu1 %v1968_v3  ;;  %v2044_v1 = vld [vmem:[#allocation10 + $0xa8] sm:$0xff]   ;;  %v2045_v2 = vld [vmem:[#allocation10 + $0xe0] sm:$0xff]  }
 0x128   :  { %v2036_v3 = vld [vmem:[#allocation10 + $0x8] sm:$0xff]  }
 0x12a   :  { %1143 = vmatpush1.bf16.msra.mxu0 %v1963_v4  ;;  %1184 = vmatpush1.bf16.msra.mxu1 %v1966_v5  ;;  %v2037_v4 = vld [vmem:[#allocation10 + $0x40] sm:$0xff]  }
 0x12b   :  { %1144 = vmatprep.subr.bf16.mxu0 %v1971_v6  ;;  %1185 = vmatprep.subr.bf16.mxu1 %v1974_v7  ;;  %v2046_v5 = vld [vmem:[#allocation10 + $0xa0] sm:$0xff]   ;;  %v2047_v6 = vld [vmem:[#allocation10 + $0xd8] sm:$0xff]  }
 0x12c   :  { %v2038_v7 = vld [vmem:[#allocation10] sm:$0xff]  }
 0x12e   :  { %1145 = vmatpush1.bf16.msra.mxu0 %v1969_v8  ;;  %1186 = vmatpush1.bf16.msra.mxu1 %v1972_v9  ;;  %v2048_v8 = vld [vmem:[#allocation10 + $0x98] sm:$0xff]   ;;  %v2049_v9 = vld [vmem:[#allocation10 + $0xd0] sm:$0xff]  }
 0x12f   :  { %1146 = vmatprep.subr.bf16.mxu0 %v1977_v10  ;;  %1187 = vmatprep.subr.bf16.mxu1 %v1980_v11  ;;  %v2050_v10 = vld [vmem:[#allocation10 + $0x90] sm:$0xff]   ;;  %v2051_v11 = vld [vmem:[#allocation10 + $0xc8] sm:$0xff]  }
 0x132   :  { %1147 = vmatpush2.bf16.msra.mxu0 %v1975_v12  ;;  %1188 = vmatpush2.bf16.msra.mxu1 %v1978_v13  ;;  %v2052_v12 = vld [vmem:[#allocation10 + $0x88] sm:$0xff]   ;;  %v2053_v13 = vld [vmem:[#allocation10 + $0xc0] sm:$0xff]  }
 0x133   :  { %1148 = vmatprep.subr.bf16.mxu0 %v1983_v17  ;;  %1189 = vmatprep.subr.bf16.mxu1 %v1986_v20  ;;  %v2054_v17 = vld [vmem:[#allocation10 + $0x80] sm:$0xff]   ;;  %v386_v20 = vld [vmem:[%s2296_s4] sm:$0xf] }
 0x136   :  { %1149 = vmatpush2.bf16.msra.mxu0 %v1981_v21  ;;  %1190 = vmatpush2.bf16.msra.mxu1 %v1984_v22  ;;  %v391_v21 = vrot.slane %v386_v20, %v106_v15  ;;  %v395_v22 = vrot.slane %v386_v20, %v110_v18  ;;  %v399_v15 = vrot.slane %v386_v20, %v114_v16 }
 0x137   :  { %1150 = vmatprep.subr.bf16.mxu0 %v1989_v23  ;;  %1191 = vmatprep.subr.bf16.mxu1 %v1992_v24  ;;  %v403_v18 = vrot.slane %v386_v20, %v118_v19 }
 0x13a   :  { %1151 = vmatpush2.bf16.msra.mxu0 %v1987_v25  ;;  %1192 = vmatpush2.bf16.msra.mxu1 %v1990_v26 }
 0x13b   :  { %1152 = vmatprep.subr.bf16.mxu0 %v1995_v27  ;;  %1193 = vmatprep.subr.bf16.mxu1 %v1998_v28 }
 0x13e   :  { %1153 = vmatpush2.bf16.msra.mxu0 %v1993_v29  ;;  %1194 = vmatpush2.bf16.msra.mxu1 %v1996_v30 }
 0x13f   :  { %1154 = vmatprep.subr.bf16.mxu0 %v2001_v31  ;;  %1195 = vmatprep.subr.bf16.mxu1 %v2004_v32 }
 0x142   :  { %1155 = vmatpush2.bf16.msra.mxu0 %v1999_v33  ;;  %1196 = vmatpush2.bf16.msra.mxu1 %v2002_v34 }
 0x143   :  { %1156 = vmatprep.subr.bf16.mxu0 %v2007_v35  ;;  %1197 = vmatprep.subr.bf16.mxu1 %v2010_v36 }
 0x146   :  { %1157 = vmatpush2.bf16.msra.mxu0 %v2005_v37  ;;  %1198 = vmatpush2.bf16.msra.mxu1 %v2008_v39 }
 0x147   :  { %1158 = vmatprep.subr.bf16.mxu0 %v2013_v40  ;;  %1199 = vmatprep.subr.bf16.mxu1 %v2016_v41 }
 0x14a   :  { %1159 = vmatpush2.bf16.msra.mxu0 %v2011_v42  ;;  %1200 = vmatpush2.bf16.msra.mxu1 %v2014_v43 }
 0x14b   :  { %1160 = vmatprep.subr.bf16.mxu0 %v2019_v44  ;;  %1201 = vmatprep.subr.bf16.mxu1 %v2022_v46 }
 0x14e   :  { %1161 = vmatpush2.bf16.msra.mxu0 %v2017_v47  ;;  %1202 = vmatpush2.bf16.msra.mxu1 %v2020_v48 }
 0x14f   :  { %1764 = vmatprep.subr.bf16.mxu0 %v2023_v49  ;;  %1786 = vmatprep.subr.bf16.mxu1 %v2039_v58 }
 0x151   :  { %1163 = vmatmul.mubr.bf16.vlgmr.msra.gmra.mxu0 %v2269_v45  ;;  %1204 = vmatmul.mubr.bf16.vlgmr.msra.gmra.mxu1 %v2267_v38  ;;  %v2033_v45 = vld [vmem:[#allocation10 + $0x50] sm:$0xff]  }
 0x152   :  { %1765 = vmatpush3.bf16.msra.mxu0 %v2024_v50  ;;  %1787 = vmatpush3.bf16.msra.mxu1 %v2040_v59  ;;  %v2042_v38 = vld [vmem:[#allocation10 + $0xb0] sm:$0xff]  }
 0x153   :  { %1766 = vmatprep.subr.bf16.mxu0 %v2025_v51  ;;  %1788 = vmatprep.subr.bf16.mxu1 %v2041_v60  ;;  %v1731_v59 = vld [vmem:[%s2298_s6] ss:$0 sm:$0xff]  ;;  %s2197_s6 = smov [#allocation11]  }
 0x154   :  { %s1582_s28 = sshll.u32 %s2197_s6, 4  ;;  %s1583_s28 = int_to_ptr.vmem [resolvable:$true] %s1582_s28 }
 0x155   :  { %s2159_s29 = scalar_lea.vmem %s1583_s28, 128  ;;  %p2164_p12 = scmp.lt.s32.totalorder %s1583_s28, %s1583_s28 }
 0x156   :  { %1767 = vmatpush3.bf16.msra.mxu0 %v2026_v52  ;;  %1789 = vmatpush3.bf16.msra.mxu1 %v2042_v38  ;;  %p2160_p11 = scmp.ne.s32.totalorder %s1583_s28, %s2159_s29  ;;  %p2165_p13 = scmp.lt.s32.totalorder %s2159_s29, %s2159_s29 }
 0x157   :  { %1768 = vmatprep.subr.bf16.mxu0 %v2027_v53  ;;  %1790 = vmatprep.subr.bf16.mxu1 %v2043_v62 }
 0x158   :  { %p2166_p0 = por %p2165_p13, %p2164_p12 }
 0x15a   :  { %1769 = vmatpush3.bf16.msra.mxu0 %v2028_v54  ;;  %1791 = vmatpush3.bf16.msra.mxu1 %v2044_v1  ;;  %p2167_p1 = pnand %p2166_p0, %p2160_p11 }
 0x15b   :  { %1770 = vmatprep.subr.bf16.mxu0 %v2029_v55  ;;  %1792 = vmatprep.subr.bf16.mxu1 %v2045_v2 }
 0x15e   :  { %1771 = vmatpush3.bf16.msra.mxu0 %v2030_v56  ;;  %1793 = vmatpush3.bf16.msra.mxu1 %v2046_v5 }
 0x15f   :  { %1772 = vmatprep.subr.bf16.mxu0 %v2031_v57  ;;  %1794 = vmatprep.subr.bf16.mxu1 %v2047_v6 }
 0x162   :  { %1773 = vmatpush3.bf16.msra.mxu0 %v2032_v61  ;;  %1795 = vmatpush3.bf16.msra.mxu1 %v2048_v8 }
 0x163   :  { %1774 = vmatprep.subr.bf16.mxu0 %v2033_v45  ;;  %1796 = vmatprep.subr.bf16.mxu1 %v2049_v9 }
 0x166   :  { %1775 = vmatpush3.bf16.msra.mxu0 %v2034_v63  ;;  %1797 = vmatpush3.bf16.msra.mxu1 %v2050_v10 }
 0x167   :  { %1776 = vmatprep.subr.bf16.mxu0 %v2035_v0  ;;  %1798 = vmatprep.subr.bf16.mxu1 %v2051_v11 }
 0x16a   :  { %1777 = vmatpush3.bf16.msra.mxu0 %v2036_v3  ;;  %1799 = vmatpush3.bf16.msra.mxu1 %v2052_v12 }
 0x16b   :  { %1778 = vmatprep.subr.bf16.mxu0 %v2037_v4  ;;  %1800 = vmatprep.subr.bf16.mxu1 %v2053_v13 }
 0x16e   :  { %1779 = vmatpush3.bf16.msra.mxu0 %v2038_v7  ;;  %1801 = vmatpush3.bf16.msra.mxu1 %v2054_v17 }
 0x1d1   :  { %v1082_v23 = vpop.f32.mrf.mxu0  ;;  %v1123_v24 = vpop.f32.mrf.mxu1 }
 0x1d2   :  { %v1083_v25 = vadd.f32 %v1082_v23, %v391_v21 }
 0x1d3   :  { %v1084_v26 = vpop.f32.mrf.mxu0  ;;  %v1125_v27 = vpop.f32.mrf.mxu1 }
 0x1d4   :  { %v1124_v28 = vadd.f32 %v1123_v24, %v1083_v25  ;;  %v1085_v29 = vadd.f32 %v1084_v26, %v395_v22 }
 0x1d5   :  { %v1086_v30 = vpop.f32.mrf.mxu0  ;;  %v1127_v31 = vpop.f32.mrf.mxu1 }
 0x1d6   :  { %v1126_v32 = vadd.f32 %v1125_v27, %v1085_v29  ;;  %v1212_v33 = vmax.f32 %v1124_v28, 0.0 }
 0x1d7   :  { %v1087_v34 = vpop.f32.mrf.mxu0  ;;  %v1128_v35 = vpop.f32.mrf.mxu1 }
 0x1d8   :  { %v1213_v36 = vmax.f32 %v1126_v32, 0.0  ;;  %v1216_v39 = vpack.c.bf16 %v1212_v33, %v1212_v33 }
 0x1da   :  { %v1217_v37 = vpack.c.bf16 %v1213_v36, %v1213_v36 }
 0x1dc   :  { %1515 = vmatprep.mubr.bf16.mxu0 %v1217_v37 }
 0x1dd   :  { %1516 = vmatmul.mubr.bf16.vlgmr.msra.gmra.mxu0 %v1216_v39 }
 0x211   :  { %v1164_v40 = vpop.f32.mrf.mxu0  ;;  %v1205_v41 = vpop.f32.mrf.mxu1 }
 0x212   :  { %v1165_v42 = vadd.f32 %v1164_v40, %v399_v15 }
 0x213   :  { %v1166_v43 = vpop.f32.mrf.mxu0  ;;  %v1207_v44 = vpop.f32.mrf.mxu1 }
 0x214   :  { %v1206_v46 = vadd.f32 %v1205_v41, %v1165_v42  ;;  %v1167_v47 = vadd.f32 %v1166_v43, %v403_v18 }
 0x215   :  { %v1168_v48 = vpop.f32.mrf.mxu0  ;;  %v1209_v49 = vpop.f32.mrf.mxu1 }
 0x216   :  { %v1208_v50 = vadd.f32 %v1207_v44, %v1167_v47  ;;  %v1214_v51 = vmax.f32 %v1206_v46, 0.0 }
 0x217   :  { %v1169_v52 = vpop.f32.mrf.mxu0  ;;  %v1210_v53 = vpop.f32.mrf.mxu1 }
 0x218   :  { %v1215_v54 = vmax.f32 %v1208_v50, 0.0  ;;  %v1218_v56 = vpack.c.bf16 %v1214_v51, %v1214_v51 }
 0x21a   :  { %v1219_v55 = vpack.c.bf16 %v1215_v54, %v1215_v54 }
 0x21c   :  { %1555 = vmatprep.mubr.bf16.mxu1 %v1219_v55 }
 0x21d   :  { %1556 = vmatmul.mubr.bf16.vlgmr.msra.gmra.mxu1 %v1218_v56 }
 0x29d   :  { %v1780_v14 = vpop.f32.mrf.mxu0 }
 0x29f   :  { %v1781_v16 = vpop.f32.mrf.mxu0 }
 0x2a0   :  { %v1782_v58 = vadd.f32 %v1781_v16, %v1780_v14 }
 0x2a1   :  { %v1783_v19 = vpop.f32.mrf.mxu0 }
 0x2a2   :  { %v1518_v45 = vadd.f32 %v1782_v58, %v1731_v59 }
 0x2a3   :  { %v1784_v57 = vpop.f32.mrf.mxu0 }
 0x2dd   :  { %v1802_v60 = vpop.f32.mrf.mxu1 }
 0x2df   :  { %v1803_v61 = vpop.f32.mrf.mxu1 }
 0x2e0   :  { %v1804_v38 = vadd.f32 %v1803_v61, %v1802_v60 }
 0x2e1   :  { %v1805_v62 = vpop.f32.mrf.mxu1 }
 0x2e2   :  { %v1558_v63 = vadd.f32 %v1804_v38, %v1518_v45 }
 0x2e3   :  { %v1806_v0 = vpop.f32.mrf.mxu1 }
 0x2e4   :  { %1563 = vmax.xlane.f32.xlu0 %v1558_v63 }
 0x36d   :  { %v1564_v1 = vpop.xlane.xlu0 %1563 }
 0x36e   :  { %v1565_v2 = vsub.f32 %v1558_v63, %v1564_v1 }
 0x370   :  { %v1566_v3 = vmul.f32 1.442695, %v1565_v2 }
 0x372   :  { %2055 = vpow2.f32 %v1566_v3 }
 0x37f   :  { %v2056_v4 = vpop.eup %2055 }
 0x380   :  { %1568 = vadd.xlane.f32.xlu0 %v2056_v4 }
 0x409   :  { %v1569_v5 = vpop.xlane.xlu0 %1568 }
 0x40a   :  { %2057 = vrcp.f32 %v1569_v5 }
 0x417   :  { %v2058_v6 = vpop.eup %2057 }
 0x418   :  { %v1571_v7 = vmul.f32 %v2058_v6, %v1569_v5 }
 0x41a   :  { %v1572_v8 = vsub.f32 2.0, %v1571_v7 }
 0x41c   :  { %v1573_v9 = vmul.f32 %v2058_v6, %v1572_v8 }
 0x41e   :  { %v1574_v10 = vmul.f32 %v2056_v4, %v1573_v9 }
 0x420   :  { %1575 = vst [vmem:[#allocation11] sm:$0xff] %v1574_v10 }
 0x421   :  { %2170 = shalt.err (!%p2167_p1)
}
 0x422   :  { %1585 = dma.vmem_to_hbm [thread:$0]  %s1583_s28, 128, %s2299_s7, [#allocation4]  }
 0x423   :  { %2185 = dma.done.wait [#allocation4], 128  }
 0x424   :  { %2186 = vsyncadd [#allocation4], 4294967168 }
 0x425   :  { %1589 = vsyncpa [#allocation3], 1 }
 0x426   :  { %1590 = vsyncpa [#allocation6], 1 }
 0x427   :  { %1591 = vsyncpa [#allocation9], 1 }
 0x428   :  { %1592 = vsyncpa [#allocation4], 1 }

</bundles_post_ra>
